<compile_context>
chip_gen: v7x
topology: tpu7x:2x2x1
jax: 0.10.0
libtpu: 0.0.40
codegen_flags: <defaults>
</compile_context>

<pallas_src>
import jax
import jax.numpy as jnp
import numpy as np
from jax import lax
from jax.experimental import pallas as pl
from jax.experimental.pallas import tpu as pltpu


def attention_kernel(enc_ref, hb_ref, w_e_ref, v_ref, seg_ref, out_ref):
    # One big matmul per grid step: [BB*S, E2] @ [E2, H] -> [BB*S, H], f32 accumulate.
    pre = jnp.dot(enc_ref[...], w_e_ref[...], preferred_element_type=jnp.float32)
    # Hoisted hidden contribution (hidden @ W_h + b, repeated over S) added in f32.
    energy = jnp.tanh(pre + hb_ref[...])                       # [BB*S, H] f32

    # v-projection, contracting H; result is lane-dense over the whole block.
    scores = lax.dot_general(
        v_ref[...], energy,
        dimension_numbers=(((1,), (1,)), ((), ())),
        preferred_element_type=jnp.float32)                    # [1, BB*S]

    # Stable per-batch softmax over each S-lane segment.
    # Subtracting the block-wide max is mathematically exact (one constant for
    # numerator and denominator of every segment) and numerically safe here:
    # scores = v . tanh(.) are bounded by sum(|v|), so no segment underflows.
    m = jnp.max(scores, axis=1, keepdims=True)
    ex = jnp.exp(scores - m)                                   # [1, BB*S]

    # Per-batch denominators with one tiny MXU push: seg_ref[r, i] == 1 iff
    # lanes r and i belong to the same batch, so lane i receives the sum of
    # exp over its own batch's S lanes.
    denom = jnp.dot(ex, seg_ref[...], preferred_element_type=jnp.float32)

    # EUP reciprocal (off the VALU slot) + one Newton step to keep the f32
    # path at ~1e-7 relative error regardless of the HW approximation.
    inv = pl.reciprocal(denom, approx=True)
    inv = inv * (2.0 - denom * inv)

    out_ref[0] = (ex * inv).astype(out_ref.dtype)              # single [1, BB*S] store


def attention_forward(hidden, encoder_outputs, w_attn, b_attn, v_w,
                      *, mxu_dtype=jnp.bfloat16, num_blocks=None):
    """hidden: [B, 2*dec_hid], encoder_outputs: [B, S, 2*enc_hid]
       w_attn: [H, 2*dec_hid + 2*enc_hid] (PyTorch Linear layout), b_attn: [H], v_w: [1, H]"""
    B, D2 = hidden.shape
    _, S, E2 = encoder_outputs.shape
    H = w_attn.shape[0]

    # Split the PyTorch weight: cat order in forward() is (hidden, encoder_outputs).
    w_h = jnp.asarray(w_attn[:, :D2], jnp.float32).T           # [D2, H]
    w_e = jnp.asarray(w_attn[:, D2:], jnp.float32).T           # [E2, H]

    # Hoisted hidden contribution: one fused XLA matmul + bias, repeated over S.
    # (B*S*H bytes extra input is negligible vs. the B*S*E2 encoder stream and
    # removes an MXU push + the W_h operand from every grid step.)
    hb = jnp.asarray(hidden, jnp.float32) @ w_h + jnp.asarray(b_attn, jnp.float32)[None, :]
    hb_rep = jnp.repeat(hb, S, axis=0)                         # [B*S, H], row b*S+s -> batch b

    enc_flat = jnp.asarray(encoder_outputs, mxu_dtype).reshape(B * S, E2)
    w_e_c = w_e.astype(mxu_dtype)
    v2 = jnp.asarray(v_w, jnp.float32).reshape(1, H)

    # Batch blocking: NB grid steps of BB batches each (NB=2 lets v7x/megacore
    # run both cores; each step still does one big matmul).
    if num_blocks is None:
        num_blocks = 2 if (B % 2 == 0 and ((B // 2) * S) % 8 == 0) else 1
    NB = num_blocks
    assert B % NB == 0, "batch must divide evenly into grid blocks"
    BB = B // NB
    assert NB == 1 or (BB * S) % 8 == 0, "block sublane extent must be 8-aligned"

    # Block-diagonal "same batch segment" ones matrix for the per-batch softmax sums.
    r = np.arange(BB * S)
    seg = jnp.asarray((r[:, None] // S) == (r[None, :] // S), jnp.float32)  # [BB*S, BB*S]

    out = pl.pallas_call(
        attention_kernel,
        out_shape=jax.ShapeDtypeStruct((NB, 1, BB * S), jnp.float32),
        grid_spec=pltpu.PrefetchScalarGridSpec(
            num_scalar_prefetch=0,
            grid=(NB,),
            in_specs=[
                pl.BlockSpec((BB * S, E2), lambda i: (i, 0)),       # encoder outputs (flattened)
                pl.BlockSpec((BB * S, H), lambda i: (i, 0)),        # hidden@W_h + b (repeated)
                pl.BlockSpec((E2, H), lambda i: (0, 0)),            # W_e
                pl.BlockSpec((1, H), lambda i: (0, 0)),             # v
                pl.BlockSpec((BB * S, BB * S), lambda i: (0, 0)),   # segment-sum matrix
            ],
            out_specs=pl.BlockSpec((1, 1, BB * S), lambda i: (i, 0, 0)),
        ),
        compiler_params=pltpu.CompilerParams(dimension_semantics=("parallel",)),
    )(enc_flat, hb_rep, w_e_c, v2, seg)

    return out.reshape(B, S)


def attention_reference(hidden, encoder_outputs, w_attn, b_attn, v_w):
    S = encoder_outputs.shape[1]
    hid_rep = jnp.repeat(hidden[:, None, :], S, axis=1)
    cat = jnp.concatenate([hid_rep, encoder_outputs], axis=2)
    energy = jnp.tanh(jnp.einsum("bsf,hf->bsh", cat, w_attn) + b_attn)
    att = jnp.einsum("bsh,oh->bso", energy, v_w)[..., 0]
    return jax.nn.softmax(att, axis=1)


if __name__ == "__main__":
    enc_hid, dec_hid = 16, 16
    B, S = 8, 8
    E2, D2, H = 2 * enc_hid, 2 * dec_hid, dec_hid

    key = jax.random.PRNGKey(0)
    k1, k2, k3, k4, k5 = jax.random.split(key, 5)

    # deterministic parameter init (PyTorch Linear shapes)
    fan_in = E2 + D2
    w_attn = jax.random.uniform(k1, (H, fan_in), jnp.float32,
                                -1.0 / np.sqrt(fan_in), 1.0 / np.sqrt(fan_in))
    b_attn = jax.random.uniform(k2, (H,), jnp.float32,
                                -1.0 / np.sqrt(fan_in), 1.0 / np.sqrt(fan_in))
    v_w = jax.random.uniform(k3, (1, H), jnp.float32,
                             -1.0 / np.sqrt(H), 1.0 / np.sqrt(H))

    hidden = jax.random.normal(k4, (B, D2), jnp.float32)
    encoder_outputs = jax.random.normal(k5, (B, S, E2), jnp.float32)

    ref = attention_reference(hidden, encoder_outputs, w_attn, b_attn, v_w)

    # Fast path: bf16 MXU inputs, f32 accumulation / softmax (default).
    out_bf16 = attention_forward(hidden, encoder_outputs, w_attn, b_attn, v_w)
    out_bf16 = jax.block_until_ready(out_bf16)
    np.testing.assert_allclose(np.asarray(out_bf16), np.asarray(ref), rtol=2e-2, atol=2e-3)

    # Full f32 path: tight check of the kernel structure.
    out_f32 = attention_forward(hidden, encoder_outputs, w_attn, b_attn, v_w,
                                mxu_dtype=jnp.float32)
    out_f32 = jax.block_until_ready(out_f32)
    np.testing.assert_allclose(np.asarray(out_f32), np.asarray(ref), rtol=1e-4, atol=1e-6)

    print("KERNEL_OK")
</pallas_src>

<mosaic_0001>
module attributes {stable_mosaic.version = 11 : i64} {
  func.func @attention_kernel(%arg0: i32, %arg1: memref<32x32xbf16, #tpu.memory_space<vmem>>, %arg2: memref<32x16xf32, #tpu.memory_space<vmem>>, %arg3: memref<32x16xbf16, #tpu.memory_space<vmem>>, %arg4: memref<1x16xf32, #tpu.memory_space<vmem>>, %arg5: memref<32x32xf32, #tpu.memory_space<vmem>>, %arg6: memref<1x1x32xf32, #tpu.memory_space<vmem>>) attributes {dimension_semantics = [#tpu.dimension_semantics<parallel>], iteration_bounds = array<i64: 2>, scalar_prefetch = 0 : i64, scratch_operands = 0 : i64, tpu.core_type = #tpu.core_type<tc>, window_params = [{transform_indices = @transform_0, window_bounds = array<i64: 32, 32>}, {transform_indices = @transform_1, window_bounds = array<i64: 32, 16>}, {pipeline_mode = #tpu.pipeline_mode<synchronous>, transform_indices = @transform_2, window_bounds = array<i64: 32, 16>}, {pipeline_mode = #tpu.pipeline_mode<synchronous>, transform_indices = @transform_3, window_bounds = array<i64: 1, 16>}, {pipeline_mode = #tpu.pipeline_mode<synchronous>, transform_indices = @transform_4, window_bounds = array<i64: 32, 32>}, {transform_indices = @transform_5, window_bounds = array<i64: 1, 1, 32>}]} {
    %c0 = arith.constant 0 : index
    %c0_0 = arith.constant 0 : index
    %0 = vector.load %arg1[%c0, %c0_0] : memref<32x32xbf16, #tpu.memory_space<vmem>>, vector<32x32xbf16>
    %c0_1 = arith.constant 0 : index
    %c0_2 = arith.constant 0 : index
    %1 = vector.load %arg3[%c0_1, %c0_2] : memref<32x16xbf16, #tpu.memory_space<vmem>>, vector<32x16xbf16>
    %cst = arith.constant dense<0.000000e+00> : vector<32x16xf32>
    %2 = tpu.matmul %0, %1, %cst {dimension_numbers = #tpu.dot_dimension_numbers<[1], [0], [0], [1], [0, 0, 1, 1], [], []>} : vector<32x32xbf16>, vector<32x16xbf16>, vector<32x16xf32> -> vector<32x16xf32>
    %c0_3 = arith.constant 0 : index
    %c0_4 = arith.constant 0 : index
    %3 = vector.load %arg2[%c0_3, %c0_4] : memref<32x16xf32, #tpu.memory_space<vmem>>, vector<32x16xf32>
    %4 = arith.addf %2, %3 : vector<32x16xf32>
    %5 = math.tanh %4 : vector<32x16xf32>
    %c0_5 = arith.constant 0 : index
    %c0_6 = arith.constant 0 : index
    %6 = vector.load %arg4[%c0_5, %c0_6] : memref<1x16xf32, #tpu.memory_space<vmem>>, vector<1x16xf32>
    %cst_7 = arith.constant dense<0.000000e+00> : vector<1x32xf32>
    %7 = tpu.matmul %6, %5, %cst_7 {dimension_numbers = #tpu.dot_dimension_numbers<[1], [1], [0], [0], [0, 0, 1, 0], [], []>} : vector<1x16xf32>, vector<32x16xf32>, vector<1x32xf32> -> vector<1x32xf32>
    %cst_8 = arith.constant dense<0xFF800000> : vector<1xf32>
    %8 = vector.multi_reduction <maximumf>, %7, %cst_8 [1] : vector<1x32xf32> to vector<1xf32>
    %9 = vector.shape_cast %8 : vector<1xf32> to vector<1x1xf32>
    %10 = vector.broadcast %9 : vector<1x1xf32> to vector<1x32xf32>
    %11 = arith.subf %7, %10 : vector<1x32xf32>
    %12 = math.exp %11 : vector<1x32xf32>
    %c0_9 = arith.constant 0 : index
    %c0_10 = arith.constant 0 : index
    %13 = vector.load %arg5[%c0_9, %c0_10] : memref<32x32xf32, #tpu.memory_space<vmem>>, vector<32x32xf32>
    %cst_11 = arith.constant dense<0.000000e+00> : vector<1x32xf32>
    %14 = tpu.matmul %12, %13, %cst_11 {dimension_numbers = #tpu.dot_dimension_numbers<[1], [0], [0], [1], [0, 0, 1, 1], [], []>} : vector<1x32xf32>, vector<32x32xf32>, vector<1x32xf32> -> vector<1x32xf32>
    %15 = tpu.reciprocal %14 {approx = true} : vector<1x32xf32> -> vector<1x32xf32>
    %16 = arith.mulf %14, %15 : vector<1x32xf32>
    %cst_12 = arith.constant 2.000000e+00 : f32
    %17 = vector.broadcast %cst_12 : f32 to vector<1x32xf32>
    %18 = arith.subf %17, %16 : vector<1x32xf32>
    %19 = arith.mulf %15, %18 : vector<1x32xf32>
    %20 = arith.mulf %12, %19 : vector<1x32xf32>
    %c0_13 = arith.constant 0 : index
    %c0_14 = arith.constant 0 : index
    %c0_15 = arith.constant 0 : index
    %21 = vector.load %arg6[%c0_13, %c0_14, %c0_15] : memref<1x1x32xf32, #tpu.memory_space<vmem>>, vector<1x1x32xf32>
    %22 = vector.shape_cast %21 : vector<1x1x32xf32> to vector<1x32xf32>
    %23 = vector.shape_cast %20 : vector<1x32xf32> to vector<1x1x32xf32>
    tpu.vector_store %arg6[%c0_13, %c0_14, %c0_15], %23 {strides = array<i32>} : memref<1x1x32xf32, #tpu.memory_space<vmem>>, vector<1x1x32xf32>,
    return
  }
  func.func @transform_0(%arg0: i32) -> (i32, i32) {
    %c0_i32 = arith.constant 0 : i32
    %c0_i32_0 = arith.constant 0 : i32
    return %arg0, %c0_i32 : i32, i32
  }
  func.func @transform_1(%arg0: i32) -> (i32, i32) {
    %c0_i32 = arith.constant 0 : i32
    %c0_i32_0 = arith.constant 0 : i32
    return %arg0, %c0_i32 : i32, i32
  }
  func.func @transform_2(%arg0: i32) -> (i32, i32) {
    %c0_i32 = arith.constant 0 : i32
    %c0_i32_0 = arith.constant 0 : i32
    %c0_i32_1 = arith.constant 0 : i32
    return %c0_i32, %c0_i32_0 : i32, i32
  }
  func.func @transform_3(%arg0: i32) -> (i32, i32) {
    %c0_i32 = arith.constant 0 : i32
    %c0_i32_0 = arith.constant 0 : i32
    %c0_i32_1 = arith.constant 0 : i32
    return %c0_i32, %c0_i32_0 : i32, i32
  }
  func.func @transform_4(%arg0: i32) -> (i32, i32) {
    %c0_i32 = arith.constant 0 : i32
    %c0_i32_0 = arith.constant 0 : i32
    %c0_i32_1 = arith.constant 0 : i32
    return %c0_i32, %c0_i32_0 : i32, i32
  }
  func.func @transform_5(%arg0: i32) -> (i32, i32, i32) {
    %c0_i32 = arith.constant 0 : i32
    %c0_i32_0 = arith.constant 0 : i32
    %c0_i32_1 = arith.constant 0 : i32
    return %arg0, %c0_i32, %c0_i32_0 : i32, i32, i32
  }
}

</mosaic_0001>

<bundles_post_ra>
// kernel: tpu_custom_call.1
= control target key start
LH: loop header
LB: loop body
LE: loop exit
PB: predicated region body
PF: predicated region fallthrough
CT: control target
= control target key end

     0   :  { %10 = vsyncpa [#allocation3], 0  ;;  %s963_s0 = inlined_call_operand.vmem [shape: bf16[64,32], index: 0, kind: input, shape index: {}]   ;;  %s964_s1 = inlined_call_operand.vmem [shape: f32[64,16], index: 1, kind: input, shape index: {}]   ;;  %s965_s2 = inlined_call_operand.vmem [shape: bf16[32,16], index: 2, kind: input, shape index: {}]   ;;  %s966_s3 = inlined_call_operand.vmem [shape: f32[1,16], index: 3, kind: input, shape index: {}]   ;;  %s967_s4 = inlined_call_operand.vmem [shape: f32[32,32], index: 4, kind: input, shape index: {}]   ;;  %s968_s5 = inlined_call_operand.hbm [shape: f32[2,1,32], index: 5, kind: output, shape index: {}]  }
   0x1   :  { %12 = vsyncpa [#allocation3 + $0x1], 0  ;;  %s835_s18 = smov 0   ;;  %s837_s19 = smov 0  }
   0x2   :  { %s839_s20 = smov 0   ;;  %s841_s21 = smov 0  }
   0x3 LB: > { %s856_s22 = sadd.s32 4294967295, %s799_s21   ;;  %s598_s23 = sadd.s32 4294967294, %s799_s21   ;;  %s799_s21 = sphi %s841_s21, %s974_s21   ;;  %s795_s20 = sphi %s839_s20, %s973_s20   ;;  %s791_s19 = sphi %s837_s19, %s972_s19   ;;  %s787_s18 = sphi %s835_s18, %s971_s18  }
   0x4   : > { %s860_s24 = sadd.s32 1, %s799_s21   ;;  %s140_s25 = sadd.s32 1, %s795_s20 }
   0x5   : > { %s137_s26 = ssub.s32 %s799_s21, %s860_s24  ;;  %p150_p0 = scmp.ne.s32.totalorder %s795_s20, %s791_s19 }
   0x6   : > { %p138_p1 = scmp.eq.s32.totalorder %s137_s26, 0  ;;  %p151_p2 = scmp.eq.s32.totalorder %s856_s22, 1 }
   0x7   : > { %p156_p3 = scmp.ne.s32.totalorder %s791_s19, %s787_s18  ;;  %p157_p4 = scmp.eq.s32.totalorder %s598_s23, 1 }
   0x8   : > { %s871_s27 = scalar_select %p138_p1, %s795_s20, %s140_s25  }
   0x9   : > { %p873_p5 = por %p151_p2, %p150_p0  ;;  %p877_p6 = por %p157_p4, %p156_p3 }
   0xa   : > { %p601_p7 = scmp.ge.s32.totalorder %s799_s21, 1  ;;  %p202_p8 = scmp.lt.s32.totalorder %s799_s21, 3 }
   0xc   : > { %p203_p9 = pnand %p601_p7, %p202_p8 }
   0xd   : > { %v721_v0 = vld [vmem:[%s965_s2] sm:$0xff] (!%p203_p9)   ;;  %s602_s7 = sshll.u32 (!%p203_p9), %s856_s22, 2  ;;  %v722_v1 = vld [vmem:[%s965_s2 + $0x8] sm:$0xff] (!%p203_p9)   ;;  %vm281_vm0 = vcmask (!%p203_p9), 261120   ;;  %v801_v4 = vmov (!%p203_p9), 0.0|0.0   ;;  %vm802_vm1 = vmmov (!%p203_p9), 0  }
   0xe   : > { %206 = sbr.rel (%p203_p9) target bundleno = 886 (0x376), region = 40  ;;  %p235_p10 = scmp.lt.s32.totalorder (!%p203_p9), %s602_s7, 7  ;;  %635 = vmatprep.subr.bf16.mxu0 (!%p203_p9), %v721_v0  ;;  %665 = vmatprep.subr.bf16.mxu1 (!%p203_p9), %v801_v4  ;;  %v803_v5 = vmov (!%p203_p9), 0.0   ;;  %vm342_vm2 = vcmask (!%p203_p9), 130048   ;;  %v341_v24 = vld [vmem:[%s966_s3] sm:$0x1] (!%p203_p9) }
   0xf   : > { %636 = vmatpush3.bf16.msra.mxu0 (!%p203_p9), %v721_v0  ;;  %651 = vmatprep.mubr.msk.f32.mxu1 (!%p203_p9), %vm802_vm1, %v803_v5  ;;  %vm667_vm3 = vmpackc.low (!%p203_p9), %vm342_vm2, %vm342_vm2  ;;  %vm428_vm4 = vcmask (!%p203_p9), 253952   ;;  %v435_v28 = vld [vmem:[%s967_s4] sm:$0xff] (!%p203_p9)  ;;  %v436_v29 = vld [vmem:[%s967_s4 + $0x8] sm:$0xff] (!%p203_p9)  ;;  %s232_s12 = sand.u32 (!%p203_p9), 1, %s791_s19  }
  0x10   : > { %637 = vmatprep.subr.bf16.mxu0 (!%p203_p9), %v722_v1  ;;  %v437_v30 = vld [vmem:[%s967_s4 + $0x10] sm:$0xff] (!%p203_p9)  ;;  %v674_v31 = vpack.c.bf16 (!%p203_p9), %v436_v29, %v435_v28  ;;  %v438_v32 = vld [vmem:[%s967_s4 + $0x18] sm:$0xff] (!%p203_p9)  ;;  %s519_s25 = scalar_lea.sflag (!%p203_p9), [#allocation3], %s232_s12 }
  0x11   : > { %v677_v33 = vpack.c.bf16 (!%p203_p9), %v438_v32, %v437_v30 }
  0x13   : > { %638 = vmatpush3.bf16.msra.mxu0 (!%p203_p9), %v722_v1 }
  0x14   : > { %673 = vmatprep.subr.bf16.mxu0 (!%p203_p9), %v801_v4 }
  0x15   : > { %s976_s7 = smov (!%p235_p10, %s602_s7), 7 }
  0x16   : > { %s603_s10 = sshll.u32 %s976_s7, 2  ;;  %s605_s14 = sshll.u32 %s976_s7, 3 }
  0x17   : > { %s238_s13 = scalar_lea.vmem %s963_s0, %s603_s10  ;;  %s244_s17 = scalar_lea.vmem %s964_s1, %s605_s14 }
  0x18   : > { %v723_v2 = vld [vmem:[%s238_s13] sm:$0xff]   ;;  %v724_v3 = vld [vmem:[%s238_s13 + $0x8] sm:$0xff]   ;;  %v257_v6 = vld [vmem:[%s244_s17 + $0x10] sm:$0xff]  ;;  %s618_s13 = sshll.u32 %s856_s22, 4  ;;  %s233_s14 = scalar_lea.vmem [#allocation2], %s232_s12 }
  0x19   : > { %639 = vmatprep.mubr.msk.bf16.mxu0 %vm281_vm0, %v723_v2  ;;  %v255_v7 = vld [vmem:[%s244_s17] sm:$0xff]  ;;  %v258_v9 = vld [vmem:[%s244_s17 + $0x18] sm:$0xff]  ;;  %v256_v12 = vld [vmem:[%s244_s17 + $0x8] sm:$0xff]  ;;  %s531_s15 = sshll.u32 %s233_s14, 4  ;;  %s920_s23 = scalar_lea.hbm %s968_s5, %s618_s13  ;;  %s922_s15 = int_to_ptr.vmem [resolvable:$true] %s531_s15 }
  0x1a   : > { %640 = vmatmul.mubr.msk.bf16.vlgmr.msra.gmra.mrb[0].mxu0 %vm281_vm0, %v724_v3  ;;  %s737_s26 = scalar_lea.vmem %s922_s15, 16  ;;  %s804_s22 = smov [#allocation2]  }
  0x1b   : > { %662 = vmatprep.mubr.msk.f32.mxu0 %vm802_vm1, %v803_v5  ;;  %675 = vmatpush3.bf16.msra.mxu0 %v674_v31  ;;  %p738_p11 = scmp.ne.s32.totalorder %s922_s15, %s737_s26  ;;  %s741_s30 = sshll.u32 %s804_s22, 4  ;;  %s742_s30 = int_to_ptr.vmem [resolvable:$false] %s741_s30 }
  0x1c   : > { %676 = vmatprep.subr.bf16.mxu0 %v801_v4  ;;  %s743_s6 = scalar_lea.vmem %s742_s30, 32  ;;  %p744_p0 = scmp.lt.s32.totalorder %s922_s15, %s742_s30 }
  0x1d   : > { %p739_p12 = pnand %p738_p11, %p873_p5  ;;  %p745_p1 = scmp.lt.s32.totalorder %s743_s6, %s737_s26 }
  0x1f   : > { %678 = vmatpush3.bf16.msra.mxu0 %v677_v33  ;;  %p740_p13 = pneg %p739_p12  ;;  %p746_p2 = por %p745_p1, %p744_p0 }
  0x21   : > { %p747_p3 = pnand %p746_p2, %p740_p13 }
  0xed   : > { %v641_v8 = vpop.f32.mrb[0].mxu0 }
  0xee   : > { %v331_v10 = vadd.f32 %v641_v8, %v257_v6  ;;  %v322_v11 = vpop.f32.mrb[1].mxu0 }
  0xef   : > { %v323_v13 = vadd.f32 %v322_v11, %v255_v7  ;;  %v642_v14 = vpop.f32.mrb[2].mxu0 }
  0xf0   : > { %725 = vtanh.f32 %v331_v10  ;;  %v334_v15 = vadd.f32 %v642_v14, %v258_v9  ;;  %v325_v16 = vpop.f32.mrb[3].mxu0 }
  0xf1   : > { %727 = vtanh.f32 %v323_v13  ;;  %v326_v17 = vadd.f32 %v325_v16, %v256_v12 }
  0xf2   : > { %729 = vtanh.f32 %v334_v15 }
  0xf3   : > { %731 = vtanh.f32 %v326_v17 }
  0xfa   : > { %v726_v18 = vpop.eup %725 }
  0xfb   : > { %v728_v19 = vpop.eup %727 }
  0xfc   : > { %v730_v20 = vpop.eup %729 }
  0xfd   : > { %v732_v21 = vpop.eup %731  ;;  %v670_v22 = vpack.c.bf16 %v730_v20, %v726_v18 }
  0xfe   : > { %v666_v23 = vpack.c.bf16 %v732_v21, %v728_v19 }
 0x100   : > { %668 = vmatpush3.bf16.xpose.msk.msra.mxu1 %vm667_vm3, %v666_v23 }
 0x101   : > { %669 = vmatprep.subr.bf16.mxu1 %v801_v4 }
 0x108   : > { %672 = vmatpush3.bf16.xpose.msk.msra.mxu1 %vm667_vm3, %v670_v22 }
 0x10f   : > { %652 = vmatmul.mubr.msk.f32.vlgmr.msra.gmra.mrb[0].mxu1 %vm342_vm2, %v341_v24 }
 0x1e2   : > { %v424_v25 = vpop.f32.mrb[0].mxu1 }
 0x1e3   : > { %v653_v26 = vpop.f32.mrb[1].mxu1  ;;  %v429_v27 = vsel %vm428_vm4, %v424_v25, -inf }
 0x1e4   : > { %430 = vmax.xlane.f32.xlu0 %v429_v27 }
 0x271   : > { %v431_v34 = vpop.xlane.xlu0 %430 }
 0x272   : > { %v432_v35 = vsub.f32 %v424_v25, %v431_v34 }
 0x274   : > { %v433_v36 = vmul.f32 1.442695, %v432_v35 }
 0x276   : > { %733 = vpow2.f32 %v433_v36 }
 0x280   : > { %v734_v37 = vpop.eup %733 }
 0x281   : > { %663 = vmatmul.mubr.msk.f32.vlgmr.msra.gmra.mrb[4].mxu0 %vm281_vm0, %v734_v37 }
 0x354   : > { %v508_v38 = vpop.f32.mrb[4].mxu0 }
 0x355   : > { %735 = vrcp.f32 %v508_v38  ;;  %v664_v39 = vpop.f32.mrb[5].mxu0 }
 0x35f   : > { %v736_v40 = vpop.eup %735 }
 0x360   : > { %v513_v41 = vmul.f32 %v736_v40, %v508_v38 }
 0x362   : > { %v514_v42 = vsub.f32 2.0, %v513_v41 }
 0x364   : > { %v515_v43 = vmul.f32 %v736_v40, %v514_v42 }
 0x366   : > { %v516_v44 = vmul.f32 %v734_v37, %v515_v43 }
 0x368   : > { %517 = vst.msk [vmem:[%s233_s14] sm:$0x1] %vm428_vm4, %v516_v44 }
 0x369   : > { %750 = shalt.err (!%p747_p3)
}
 0x36a   : > { %s751_s7 = scalar_lea.hbm %s920_s23, 16  ;;  %s755_s10 = scalar_lea.hbm %s968_s5, 32 }
 0x36b   : > { %p752_p4 = scmp.ne.s32.totalorder %s920_s23, %s751_s7  ;;  %p756_p9 = scmp.lt.u32.totalorder %s920_s23, %s968_s5 }
 0x36c   : > { %p757_p10 = scmp.lt.u32.totalorder %s755_s10, %s751_s7  ;;  %p759_p12 = scmp.lt.u32.totalorder %s751_s7, %s920_s23 }
 0x36d   : > { %p753_p7 = pnand %p752_p4, %p873_p5 }
 0x36e   : > { %p758_p11 = por %p757_p10, %p756_p9 }
 0x36f   : > { %p754_p8 = pneg %p753_p7 }
 0x370   : > { %p760_p13 = por %p759_p12, %p758_p11 }
 0x372   : > { %p761_p0 = pnand %p760_p13, %p754_p8 }
 0x374   : > { %764 = shalt.err (!%p761_p0)
}
 0x375   : > { %679 = dma.vmem_to_hbm [thread:$0]  (%p873_p5), %s922_s15, 16, %s920_s23, %s519_s25  }
 0x376 PF: > { %p685_p1 = scmp.ge.s32.totalorder %s799_s21, 2  ;;  %s543_s13 = sand.u32 1, %s787_s18  }
 0x377   : > { %s544_s14 = scalar_lea.sflag [#allocation3], %s543_s13 }
 0x378   : > { %p682_p2 = pnand %p685_p1, %p877_p6 }
 0x37a   : > { %782 = dma.done.wait (!%p682_p2), %s544_s14, 16  }
 0x37b   : > { %784 = vsyncadd (!%p682_p2), %s544_s14, 4294967280  ;;  %p15_p3 = scmp.ge.s32.totalorder %s860_s24, 4   ;;  %s971_s18 = smov %s791_s19 }
 0x37c   : > { %s972_s19 = smov %s795_s20  ;;  %s973_s20 = smov %s871_s27 }
 0x37d   : > { %s974_s21 = smov %s860_s24  ;;  %17 = sbr.rel (!%p15_p3) target bundleno = 3 (0x3), region = 78 }
 0x384   :  { %548 = vsyncpa [#allocation3], 1 }
 0x385   :  { %550 = vsyncpa [#allocation3 + $0x1], 1 }

</bundles_post_ra>
